<compile_context>
chip_gen: v5e
topology: v5e:2x2
jax: 0.10.0
libtpu: 0.0.40
codegen_flags: <defaults>
</compile_context>

<pallas_src>
from functools import partial

import jax
import jax.numpy as jnp
from jax.experimental import pallas as pl
from jax.experimental.pallas import tpu as pltpu


CL = 128        # lane width of the packed weight / bias / output slabs
HALF = 64       # lane offset of the second packed edge (requires n_channels <= 64)
KF_PAD = 16     # sublane-padded K of the stem-folded first layer (one bf16 row tile)

GRAPH = [("S", "1"), ("S", "2"), ("1", "T"), ("2", "T")]


# ----------------------------------------------------------------------------
# Fused Pallas kernel: whole ModelGraph forward in a single launch
# ----------------------------------------------------------------------------
def _fused_graph_kernel(x_ref, w_ref, b_ref, o_ref, *, B, Lh):
    """Fused forward.

    x_ref : [M, KF_PAD]   im2col'd stem input, zero-padded K (M = B*Lh)
    w_ref : [272, CL]     bf16 weight slab: rows 0:16   -> stem-folded S->1|S->2
                                            rows 16:144 -> 1->T | 2->T (block-diag)
                                            rows 144:272-> classifier
    b_ref : [8, CL]       f32 bias slab: row 0 first layer, row 1 second, row 2 cls
    o_ref : [B, CL]       logits (lanes >= n_classes are zero padding)
    """
    # Static 16-row-aligned views into the single packed bf16 weight slab
    # (never cross a bf16 (16,128) tile boundary).
    w_first = w_ref[0:KF_PAD, :].astype(jnp.float32)                 # [16, 128]
    w_t = w_ref[KF_PAD:KF_PAD + CL, :].astype(jnp.float32)           # [128, 128]
    w_c = w_ref[KF_PAD + CL:KF_PAD + 2 * CL, :].astype(jnp.float32)  # [128, 128]

    b_first = b_ref[0:1, :]                                          # [1, 128]
    b_t = b_ref[1:2, :]
    b_c = b_ref[2:3, :]

    # ---- layer 1: stem folded into edges S->1 | S->2 (packed at lanes 0 / 64) ----
    h12 = jnp.dot(x_ref[...], w_first,
                  preferred_element_type=jnp.float32) + b_first      # [M, 128]
    h12 = jnp.maximum(h12, 0.0)                                      # state1 | state2

    # ---- layer 2: edges 1->T | 2->T, block-diagonal at 64-lane offset ----
    ht = jnp.dot(h12, w_t,
                 preferred_element_type=jnp.float32) + b_t           # [M, 128]
    ht = jnp.maximum(ht, 0.0)

    # ---- node T combine (ADD): 64-lane rotate on the XLU + add ----
    # lanes 0:64 now hold state(1->T) + state(2->T); the duplicated upper lanes
    # are masked later by the zero rows >= 64 of the classifier weight.
    t = ht + pltpu.roll(ht, shift=HALF, axis=1)                      # [M, 128]

    # ---- global average pool over L: per-batch cross-sublane mean (XLU) ----
    pooled = jnp.mean(t.reshape(B, Lh, CL), axis=1)                  # [B, 128]

    # ---- classifier ----
    logits = jnp.dot(pooled, w_c,
                     preferred_element_type=jnp.float32) + b_c       # [B, 128]
    o_ref[...] = logits.astype(o_ref.dtype)


# ----------------------------------------------------------------------------
# Parameter construction
# ----------------------------------------------------------------------------
def init_params(key, n_features, n_channels, n_classes):
    """Logical (unpadded) f32 parameters, matching the PyTorch module layout."""
    ks = jax.random.split(key, 4 + 2 * len(GRAPH))
    params = {}
    # stem Conv1d(n_features, n_channels, kernel=2, stride=2):
    #   PyTorch weight [C_out, C_in, K] -> flattened matmul weight [K*C_in, C_out]
    w_stem = 0.1 * jax.random.normal(ks[0], (n_channels, n_features, 2), jnp.float32)
    params["stem_w"] = jnp.transpose(w_stem, (2, 1, 0)).reshape(2 * n_features, n_channels)
    params["stem_b"] = 0.1 * jax.random.normal(ks[1], (n_channels,), jnp.float32)
    # per-edge pointwise conv (C -> C) + ReLU
    for idx, (src, dst) in enumerate(GRAPH):
        params[f"edge_{src}_{dst}_w"] = 0.1 * jax.random.normal(
            ks[2 + 2 * idx], (n_channels, n_channels), jnp.float32)
        params[f"edge_{src}_{dst}_b"] = 0.1 * jax.random.normal(
            ks[3 + 2 * idx], (n_channels,), jnp.float32)
    # classifier Linear(C, n_classes): stored as [C, n_classes]
    params["cls_w"] = 0.1 * jax.random.normal(ks[-2], (n_channels, n_classes), jnp.float32)
    params["cls_b"] = 0.1 * jax.random.normal(ks[-1], (n_classes,), jnp.float32)
    return params


def prepare_fused_params(params, n_features, n_channels, n_classes):
    """One-time repack: fold stem, pack edges at 64-lane offsets, merge into
    one bf16 weight slab + one f32 bias slab (2 DMAs total)."""
    C = n_channels
    KF = 2 * n_features
    assert C <= HALF, "edge packing assumes n_channels <= 64"
    assert KF <= KF_PAD, "stem im2col K must fit in one 16-row bf16 tile"
    assert n_classes <= CL, "classifier must fit in 128 lanes"
    f32 = jnp.float32

    # Fold the (purely linear) stem into the first edge layer -- exact because
    # no normalisation/activation sits between the stem and the S->* edges here.
    w_s1 = params["stem_w"] @ params["edge_S_1_w"]                    # [KF, C]
    w_s2 = params["stem_w"] @ params["edge_S_2_w"]
    b_s1 = params["stem_b"] @ params["edge_S_1_w"] + params["edge_S_1_b"]
    b_s2 = params["stem_b"] @ params["edge_S_2_w"] + params["edge_S_2_b"]

    w_first = jnp.zeros((KF_PAD, CL), f32)
    w_first = w_first.at[:KF, :C].set(w_s1).at[:KF, HALF:HALF + C].set(w_s2)

    w_t = jnp.zeros((CL, CL), f32)
    w_t = w_t.at[:C, :C].set(params["edge_1_T_w"])
    w_t = w_t.at[HALF:HALF + C, HALF:HALF + C].set(params["edge_2_T_w"])

    w_c = jnp.zeros((CL, CL), f32).at[:C, :n_classes].set(params["cls_w"])

    # One contiguous bf16 weight slab; each piece starts at a 16-row boundary.
    w_all = jnp.concatenate([w_first, w_t, w_c], axis=0).astype(jnp.bfloat16)

    # One contiguous f32 bias slab.  Padded lanes stay exactly zero, so they are
    # preserved through bias-add + ReLU and masked by the zero w_c rows/columns.
    b_all = jnp.zeros((8, CL), f32)
    b_all = b_all.at[0, :C].set(b_s1).at[0, HALF:HALF + C].set(b_s2)
    b_all = b_all.at[1, :C].set(params["edge_1_T_b"])
    b_all = b_all.at[1, HALF:HALF + C].set(params["edge_2_T_b"])
    b_all = b_all.at[2, :n_classes].set(params["cls_b"])

    return {"w_all": w_all, "b_all": b_all}


# ----------------------------------------------------------------------------
# Forward pass (single fused pallas_call)
# ----------------------------------------------------------------------------
@partial(jax.jit, static_argnames=("n_classes",))
def model_graph_forward(x, fparams, *, n_classes):
    """x: [B, n_features, L]  (NCL, matches PyTorch Conv1d input)."""
    B, F, L = x.shape
    assert L % 2 == 0, "stem Conv1d(k=2, s=2) requires even signal_length"
    Lh = L // 2

    # im2col for the stride-2 stem: [B,F,L] -> [B*Lh, 2F], K zero-padded to 16.
    # Tiny (512 B) and executed inside the same jit'd program.
    x2 = jnp.transpose(x, (0, 2, 1)).reshape(B * Lh, 2 * F)
    x2 = jnp.pad(x2, ((0, 0), (0, KF_PAD - 2 * F)))

    out = pl.pallas_call(
        partial(_fused_graph_kernel, B=B, Lh=Lh),
        out_shape=jax.ShapeDtypeStruct((B, CL), jnp.float32),
        in_specs=[pl.BlockSpec(memory_space=pltpu.MemorySpace.VMEM)] * 3,
        out_specs=pl.BlockSpec(memory_space=pltpu.MemorySpace.VMEM),
        # No grid: the whole problem (~72 KiB of operands) is VMEM-resident in a
        # single launch; see TODO(synk) above for the large-B*L tiling path.
    )(x2, fparams["w_all"], fparams["b_all"])
    return out[:, :n_classes]


# ----------------------------------------------------------------------------
# Pure-JAX reference (original-module semantics, unfused f32)
# ----------------------------------------------------------------------------
def reference_forward(x, params):
    B, F, L = x.shape
    Lh = L // 2
    C = params["stem_b"].shape[0]
    xT = jnp.transpose(x, (0, 2, 1))
    x2 = xT.reshape(B * Lh, 2 * F)
    s = x2 @ params["stem_w"] + params["stem_b"]
    states = {"S": s}
    for (src, dst) in GRAPH:
        h = jnp.maximum(
            states[src] @ params[f"edge_{src}_{dst}_w"] + params[f"edge_{src}_{dst}_b"], 0.0)
        states[dst] = h if dst not in states else states[dst] + h
    t = states["T"].reshape(B, Lh, C)
    pooled = jnp.mean(t, axis=1)
    return pooled @ params["cls_w"] + params["cls_b"]


if __name__ == "__main__":
    B, n_features, n_channels, n_classes, signal_length = 2, 4, 32, 5, 16

    key = jax.random.PRNGKey(0)
    k_x, k_p = jax.random.split(key)
    x = jax.random.normal(k_x, (B, n_features, signal_length), jnp.float32)

    params = init_params(k_p, n_features, n_channels, n_classes)
    fused_params = prepare_fused_params(params, n_features, n_channels, n_classes)

    out = model_graph_forward(x, fused_params, n_classes=n_classes)
    out = jax.block_until_ready(out)

    ref = reference_forward(x, params)
    assert out.shape == (B, n_classes)
    # Tolerance accounts for bf16 weight storage (f32 accumulation everywhere).
    assert jnp.allclose(out, ref, atol=2e-2, rtol=2e-2)

    print("KERNEL_OK")
</pallas_src>

<mosaic_0001>
module attributes {stable_mosaic.version = 11 : i64} {
  func.func @_fused_graph_kernel(%arg0: memref<16x16xf32, #tpu.memory_space<vmem>>, %arg1: memref<272x128xbf16, #tpu.memory_space<vmem>>, %arg2: memref<8x128xf32, #tpu.memory_space<vmem>>, %arg3: memref<2x128xf32, #tpu.memory_space<vmem>>) attributes {dimension_semantics = [], scalar_prefetch = 0 : i64, scratch_operands = 0 : i64, tpu.core_type = #tpu.core_type<tc>} {
    %c0 = arith.constant 0 : index
    %c0_0 = arith.constant 0 : index
    %0 = vector.load %arg1[%c0, %c0_0] : memref<272x128xbf16, #tpu.memory_space<vmem>>, vector<16x128xbf16>
    %1 = arith.extf %0 : vector<16x128xbf16> to vector<16x128xf32>
    %c16 = arith.constant 16 : index
    %c0_1 = arith.constant 0 : index
    %2 = vector.load %arg1[%c16, %c0_1] : memref<272x128xbf16, #tpu.memory_space<vmem>>, vector<128x128xbf16>
    %3 = arith.extf %2 : vector<128x128xbf16> to vector<128x128xf32>
    %c144 = arith.constant 144 : index
    %c0_2 = arith.constant 0 : index
    %4 = vector.load %arg1[%c144, %c0_2] : memref<272x128xbf16, #tpu.memory_space<vmem>>, vector<128x128xbf16>
    %5 = arith.extf %4 : vector<128x128xbf16> to vector<128x128xf32>
    %c0_3 = arith.constant 0 : index
    %c0_4 = arith.constant 0 : index
    %6 = vector.load %arg2[%c0_3, %c0_4] : memref<8x128xf32, #tpu.memory_space<vmem>>, vector<1x128xf32>
    %c1 = arith.constant 1 : index
    %c0_5 = arith.constant 0 : index
    %7 = vector.load %arg2[%c1, %c0_5] : memref<8x128xf32, #tpu.memory_space<vmem>>, vector<1x128xf32>
    %c2 = arith.constant 2 : index
    %c0_6 = arith.constant 0 : index
    %8 = vector.load %arg2[%c2, %c0_6] : memref<8x128xf32, #tpu.memory_space<vmem>>, vector<1x128xf32>
    %c0_7 = arith.constant 0 : index
    %c0_8 = arith.constant 0 : index
    %9 = vector.load %arg0[%c0_7, %c0_8] : memref<16x16xf32, #tpu.memory_space<vmem>>, vector<16x16xf32>
    %cst = arith.constant dense<0.000000e+00> : vector<16x128xf32>
    %10 = tpu.matmul %9, %1, %cst {dimension_numbers = #tpu.dot_dimension_numbers<[1], [0], [0], [1], [0, 0, 1, 1], [], []>} : vector<16x16xf32>, vector<16x128xf32>, vector<16x128xf32> -> vector<16x128xf32>
    %11 = vector.broadcast %6 : vector<1x128xf32> to vector<16x128xf32>
    %12 = arith.addf %10, %11 : vector<16x128xf32>
    %cst_9 = arith.constant 0.000000e+00 : f32
    %13 = vector.broadcast %cst_9 : f32 to vector<16x128xf32>
    %14 = arith.maximumf %12, %13 : vector<16x128xf32>
    %cst_10 = arith.constant dense<0.000000e+00> : vector<16x128xf32>
    %15 = tpu.matmul %14, %3, %cst_10 {dimension_numbers = #tpu.dot_dimension_numbers<[1], [0], [0], [1], [0, 0, 1, 1], [], []>} : vector<16x128xf32>, vector<128x128xf32>, vector<16x128xf32> -> vector<16x128xf32>
    %16 = vector.broadcast %7 : vector<1x128xf32> to vector<16x128xf32>
    %17 = arith.addf %15, %16 : vector<16x128xf32>
    %cst_11 = arith.constant 0.000000e+00 : f32
    %18 = vector.broadcast %cst_11 : f32 to vector<16x128xf32>
    %19 = arith.maximumf %17, %18 : vector<16x128xf32>
    %c64_i32 = arith.constant 64 : i32
    %20 = tpu.dynamic_rotate %19 by %c64_i32 dim 1 : vector<16x128xf32>, i32 -> vector<16x128xf32>
    %21 = arith.addf %19, %20 : vector<16x128xf32>
    %22 = vector.shape_cast %21 : vector<16x128xf32> to vector<2x8x128xf32>
    %cst_12 = arith.constant dense<0.000000e+00> : vector<2x128xf32>
    %23 = vector.multi_reduction <add>, %22, %cst_12 [1] : vector<2x8x128xf32> to vector<2x128xf32>
    %cst_13 = arith.constant 8.000000e+00 : f32
    %24 = vector.broadcast %cst_13 : f32 to vector<2x128xf32>
    %25 = arith.divf %23, %24 : vector<2x128xf32>
    %cst_14 = arith.constant dense<0.000000e+00> : vector<2x128xf32>
    %26 = tpu.matmul %25, %5, %cst_14 {dimension_numbers = #tpu.dot_dimension_numbers<[1], [0], [0], [1], [0, 0, 1, 1], [], []>} : vector<2x128xf32>, vector<128x128xf32>, vector<2x128xf32> -> vector<2x128xf32>
    %27 = vector.broadcast %8 : vector<1x128xf32> to vector<2x128xf32>
    %28 = arith.addf %26, %27 : vector<2x128xf32>
    %c0_15 = arith.constant 0 : index
    %c0_16 = arith.constant 0 : index
    %29 = vector.load %arg3[%c0_15, %c0_16] : memref<2x128xf32, #tpu.memory_space<vmem>>, vector<2x128xf32>
    tpu.vector_store %arg3[%c0_15, %c0_16], %28 {strides = array<i32>} : memref<2x128xf32, #tpu.memory_space<vmem>>, vector<2x128xf32>,
    return
  }
}

</mosaic_0001>

<bundles_post_ra>
// kernel: model_graph_forward.1
= control target key start
LH: loop header
LB: loop body
LE: loop exit
PB: predicated region body
PF: predicated region fallthrough
CT: control target
= control target key end

     0   :  { %8 = vsyncpa [#allocation3], 0  ;;  %s450_s0 = inlined_call_operand.vmem [shape: f32[16,16], index: 0, kind: input, shape index: {}]   ;;  %s451_s1 = inlined_call_operand.hbm [shape: bf16[272,128], index: 1, kind: input, shape index: {}]   ;;  %s452_s2 = inlined_call_operand.vmem [shape: f32[8,128], index: 2, kind: input, shape index: {}]   ;;  %s453_s3 = inlined_call_operand.hbm [shape: f32[2,128], index: 3, kind: output, shape index: {}]  }
   0x1   :  { %9 = vsyncpa [#allocation4], 0  ;;  %s16_s14 = sshll.u32 %s451_s1, 4  ;;  %s398_s15 = smov [#allocation2]   ;;  %s17_s14 = int_to_ptr.hbm [resolvable:$true] %s16_s14 }
   0x2   :  { %s18_s16 = sshll.u32 %s398_s15, 4  ;;  %s399_s17 = smov 64   ;;  %s19_s16 = int_to_ptr.vmem [resolvable:$true] %s18_s16 }
   0x3   :  { %s400_s18 = smov 4  }
   0x4   :  { %24 = dma.hbm_to_vmem [thread:$0]  %s17_s14, 2176, %s19_s16, [#allocation3], %s399_s17, %s399_s17, %s400_s18  }
   0x5   :  { %394 = dma.done.wait [#allocation3], 2176  }
   0x6   :  { %395 = vsyncadd [#allocation3], 4294965120  ;;  %v237_v0 = vld [vmem:[#allocation2] sm:$0xff]   ;;  %v310_v4 = vld [vmem:[#allocation2 + $0x38] sm:$0xff]   ;;  %vm105_vm0 = vcmask 130048   ;;  %vm193_vm2 = vcmask 1041409  }
   0x7   :  { %v239_v1 = vunpack.c.h.bf16 %v237_v0  ;;  %v238_v2 = vunpack.c.l.bf16 %v237_v0  ;;  %v311_v3 = vld [vmem:[#allocation2 + $0x40] sm:$0xff]   ;;  %v267_v8 = vunpack.c.h.bf16 %v310_v4  ;;  %v309_v9 = vld [vmem:[#allocation2 + $0x30] sm:$0xff]   ;;  %v266_v10 = vunpack.c.l.bf16 %v310_v4  ;;  %v308_v12 = vld [vmem:[#allocation2 + $0x28] sm:$0xff]   ;;  %s402_s27 = smov [#allocation5]   ;;  %s224_s4 = sshll.u32 %s453_s3, 4  ;;  %s225_s4 = int_to_ptr.hbm [resolvable:$true] %s224_s4 }
   0x8   :  { %v271_v5 = vunpack.c.h.bf16 %v311_v3  ;;  %v270_v6 = vunpack.c.l.bf16 %v311_v3  ;;  %v102_v7 = vld [vmem:[%s450_s0] sm:$0xff]  ;;  %v263_v11 = vunpack.c.h.bf16 %v309_v9  ;;  %v262_v13 = vunpack.c.l.bf16 %v309_v9  ;;  %v103_v14 = vld [vmem:[%s450_s0 + $0x8] sm:$0xff]  ;;  %v306_v19 = vld [vmem:[#allocation2 + $0x18] sm:$0xff]   ;;  %s222_s28 = sshll.u32 %s402_s27, 4  ;;  %s223_s28 = int_to_ptr.vmem [resolvable:$true] %s222_s28 }
   0x9   :  { %126 = vmatpush.msra.mxu0 %v239_v1  ;;  %v259_v15 = vunpack.c.h.bf16 %v308_v12  ;;  %v307_v16 = vld [vmem:[#allocation2 + $0x20] sm:$0xff]   ;;  %v258_v17 = vunpack.c.l.bf16 %v308_v12  ;;  %v251_v21 = vunpack.c.h.bf16 %v306_v19  ;;  %v305_v22 = vld [vmem:[#allocation2 + $0x10] sm:$0xff]   ;;  %v250_v23 = vunpack.c.l.bf16 %v306_v19  ;;  %v304_v26 = vld [vmem:[#allocation2 + $0x8] sm:$0xff]  }
   0xa   :  { %138 = vmatpush.msra.mxu1 %v271_v5  ;;  %320 = vmatpush.msra.mxu3 %v271_v5  ;;  %v255_v18 = vunpack.c.h.bf16 %v307_v16  ;;  %v254_v20 = vunpack.c.l.bf16 %v307_v16  ;;  %v247_v24 = vunpack.c.h.bf16 %v305_v22  ;;  %v246_v25 = vunpack.c.l.bf16 %v305_v22  ;;  %v341_v29 = vld [vmem:[%s452_s2] ss:$0 sm:$0xff]  ;;  %v342_v36 = vld [vmem:[%s452_s2 + $0x1] ss:$0 sm:$0xff]  ;;  %v318_v46 = vld [vmem:[#allocation2 + $0x78] sm:$0xff]  }
   0xb   :  { %127 = vmatpush.msra.mxu0 %v238_v2  ;;  %v243_v27 = vunpack.c.h.bf16 %v304_v26  ;;  %v242_v28 = vunpack.c.l.bf16 %v304_v26  ;;  %v319_v43 = vld [vmem:[#allocation2 + $0x80] sm:$0xff]   ;;  %v299_v47 = vunpack.c.h.bf16 %v318_v46  ;;  %v298_v48 = vunpack.c.l.bf16 %v318_v46  ;;  %v317_v49 = vld [vmem:[#allocation2 + $0x70] sm:$0xff]   ;;  %v316_v52 = vld [vmem:[#allocation2 + $0x68] sm:$0xff]  }
   0xc   :  { %234 = vmatmul.msk.f32.vlgmr.msra.gmra.mxu0 %vm105_vm0, %v102_v7  ;;  %139 = vmatpush.msra.mxu1 %v270_v6  ;;  %v303_v44 = vunpack.c.h.bf16 %v319_v43  ;;  %v302_v45 = vunpack.c.l.bf16 %v319_v43  ;;  %v295_v50 = vunpack.c.h.bf16 %v317_v49  ;;  %v294_v51 = vunpack.c.l.bf16 %v317_v49  ;;  %v315_v55 = vld [vmem:[#allocation2 + $0x60] sm:$0xff]   ;;  %v314_v58 = vld [vmem:[#allocation2 + $0x58] sm:$0xff]   ;;  %v313_v61 = vld [vmem:[#allocation2 + $0x50] sm:$0xff]  }
   0xd   :  { %321 = vmatpush.msra.mxu3 %v270_v6  ;;  %v291_v53 = vunpack.c.h.bf16 %v316_v52  ;;  %v290_v54 = vunpack.c.l.bf16 %v316_v52  ;;  %v287_v56 = vunpack.c.h.bf16 %v315_v55  ;;  %v286_v57 = vunpack.c.l.bf16 %v315_v55  ;;  %v312_v0 = vld [vmem:[#allocation2 + $0x48] sm:$0xff]  }
   0xe   :  { %140 = vmatpush.msra.mxu1 %v267_v8  ;;  %196 = vmatpush.msra.mxu2 %v303_v44  ;;  %v283_v59 = vunpack.c.h.bf16 %v314_v58  ;;  %v282_v60 = vunpack.c.l.bf16 %v314_v58  ;;  %v279_v62 = vunpack.c.h.bf16 %v313_v61  ;;  %v278_v63 = vunpack.c.l.bf16 %v313_v61 }
   0xf   :  { %322 = vmatpush.msra.mxu3 %v267_v8  ;;  %v275_v1 = vunpack.c.h.bf16 %v312_v0  ;;  %v274_v2 = vunpack.c.l.bf16 %v312_v0  ;;  %v401_v5 = vmov 8.0  }
  0x10   :  { %141 = vmatpush.msra.mxu1 %v266_v10  ;;  %197 = vmatpush.msra.mxu2 %v302_v45  ;;  %344 = vrcp.f32 %v401_v5 }
  0x11   :  { %323 = vmatpush.msra.mxu3 %v266_v10 }
  0x12   :  { %142 = vmatpush.msra.mxu1 %v263_v11  ;;  %198 = vmatpush.msra.mxu2 %v299_v47 }
  0x13   :  { %324 = vmatpush.msra.mxu3 %v263_v11 }
  0x14   :  { %235 = vmatmul.msk.f32.gmra.mxu0 %vm105_vm0, %v103_v14  ;;  %143 = vmatpush.msra.mxu1 %v262_v13 }
  0x15   :  { %325 = vmatpush.msra.mxu3 %v262_v13  ;;  %199 = vmatpush.msra.mxu2 %v298_v48 }
  0x16   :  { %144 = vmatpush.msra.mxu1 %v259_v15  ;;  %v345_v7 = vpop.eup %344 }
  0x17   :  { %326 = vmatpush.msra.mxu3 %v259_v15  ;;  %200 = vmatpush.msra.mxu2 %v295_v50  ;;  %v182_v9 = vmul.f32 8.0, %v345_v7  ;;  %vm186_vm1 = vweird.f32 %v345_v7 }
  0x18   :  { %145 = vmatpush.msra.mxu1 %v258_v17 }
  0x19   :  { %327 = vmatpush.msra.mxu3 %v258_v17  ;;  %201 = vmatpush.msra.mxu2 %v294_v51  ;;  %v183_v12 = vsub.f32 1.0, %v182_v9 }
  0x1a   :  { %146 = vmatpush.msra.mxu1 %v255_v18 }
  0x1b   :  { %328 = vmatpush.msra.mxu3 %v255_v18  ;;  %202 = vmatpush.msra.mxu2 %v291_v53  ;;  %v184_v16 = vmul.f32 %v345_v7, %v183_v12 }
  0x1c   :  { %147 = vmatpush.msra.mxu1 %v254_v20 }
  0x1d   :  { %329 = vmatpush.msra.mxu3 %v254_v20  ;;  %203 = vmatpush.msra.mxu2 %v290_v54  ;;  %v185_v20 = vadd.f32 %v345_v7, %v184_v16 }
  0x1e   :  { %148 = vmatpush.msra.mxu1 %v251_v21 }
  0x1f   :  { %330 = vmatpush.msra.mxu3 %v251_v21  ;;  %204 = vmatpush.msra.mxu2 %v287_v56 }
  0x20   :  { %149 = vmatpush.msra.mxu1 %v250_v23 }
  0x21   :  { %331 = vmatpush.msra.mxu3 %v250_v23  ;;  %205 = vmatpush.msra.mxu2 %v286_v57 }
  0x22   :  { %150 = vmatpush.msra.mxu1 %v247_v24 }
  0x23   :  { %332 = vmatpush.msra.mxu3 %v247_v24  ;;  %206 = vmatpush.msra.mxu2 %v283_v59  ;;  %v187_v24 = vsel %vm186_vm1, %v345_v7, %v185_v20 }
  0x24   :  { %151 = vmatpush.msra.mxu1 %v246_v25 }
  0x25   :  { %333 = vmatpush.msra.mxu3 %v246_v25  ;;  %207 = vmatpush.msra.mxu2 %v282_v60 }
  0x26   :  { %152 = vmatpush.msra.mxu1 %v243_v27 }
  0x27   :  { %334 = vmatpush.msra.mxu3 %v243_v27  ;;  %208 = vmatpush.msra.mxu2 %v279_v62 }
  0x28   :  { %153 = vmatpush.msra.mxu1 %v242_v28 }
  0x29   :  { %335 = vmatpush.msra.mxu3 %v242_v28  ;;  %209 = vmatpush.msra.mxu2 %v278_v63 }
  0x2b   :  { %210 = vmatpush.msra.mxu2 %v275_v1 }
  0x2d   :  { %211 = vmatpush.msra.mxu2 %v274_v2 }
  0x89   :  { %v129_v30 = vpop.f32.mrf.mxu0 }
  0x8a   :  { %v130_v31 = vadd.f32 %v341_v29, %v129_v30 }
  0x8c   :  { %v135_v32 = vmax.f32 %v130_v31, 0.0 }
  0x8e   :  { %154 = vmatmul.f32.vlgmr.msra.gmra.mxu1 %v135_v32 }
  0x91   :  { %v132_v33 = vpop.f32.mrf.mxu0 }
  0x92   :  { %v133_v34 = vadd.f32 %v341_v29, %v132_v33  ;;  %v343_v29 = vld [vmem:[%s452_s2 + $0x2] ss:$0 sm:$0xff] }
  0x94   :  { %v136_v35 = vmax.f32 %v133_v34, 0.0 }
  0x96   :  { %157 = vmatmul.f32.vlgmr.msra.gmra.mxu3 %v136_v35 }
 0x10b   :  { %v155_v37 = vpop.f32.mrf.mxu1 }
 0x10c   :  { %v156_v38 = vadd.f32 %v342_v36, %v155_v37 }
 0x10e   :  { %v161_v39 = vmax.f32 %v156_v38, 0.0 }
 0x110   :  { %163 = vrot.lane.b32.xlu0 %v161_v39, %s399_s17 }
 0x119   :  { %v158_v40 = vpop.f32.mrf.mxu3 }
 0x11a   :  { %v159_v41 = vadd.f32 %v342_v36, %v158_v40 }
 0x11c   :  { %v162_v42 = vmax.f32 %v159_v41, 0.0 }
 0x11e   :  { %165 = vrot.lane.b32.xlu0 %v162_v42, %s399_s17 }
 0x182   :  { %v164_v3 = vpop.permute.xlu0 %163 }
 0x183   :  { %v167_v4 = vadd.f32 %v164_v3, %v161_v39 }
 0x185   :  { %v169_v6 = vrot.slane %v167_v4, 4 }
 0x187   :  { %v170_v8 = vadd.f32 %v169_v6, %v167_v4 }
 0x189   :  { %v171_v10 = vrot.slane %v170_v8, 2 }
 0x18b   :  { %v172_v14 = vadd.f32 %v171_v10, %v170_v8 }
 0x18d   :  { %v173_v18 = vrot.slane %v172_v14, 1 }
 0x18f   :  { %v174_v22 = vadd.f32 %v173_v18, %v172_v14 }
 0x190   :  { %v166_v11 = vpop.permute.xlu0 %165 }
 0x191   :  { %v168_v13 = vadd.f32 %v166_v11, %v162_v42  ;;  %v188_v26 = vmul.f32 %v187_v24, %v174_v22 }
 0x193   :  { %v175_v15 = vrot.slane %v168_v13, 4 }
 0x195   :  { %v176_v17 = vadd.f32 %v175_v15, %v168_v13 }
 0x197   :  { %v177_v19 = vrot.slane %v176_v17, 2 }
 0x199   :  { %v178_v21 = vadd.f32 %v177_v19, %v176_v17 }
 0x19b   :  { %v179_v23 = vrot.slane %v178_v21, 1 }
 0x19d   :  { %v180_v25 = vadd.f32 %v179_v23, %v178_v21 }
 0x19f   :  { %v189_v27 = vmul.f32 %v187_v24, %v180_v25 }
 0x1a1   :  { %v194_v28 = vsel %vm193_vm2, %v189_v27, %v188_v26 }
 0x1a2   :  { %212 = vmatmul.f32.vlgmr.msra.gmra.mxu2 %v194_v28 }
 0x225   :  { %v213_v30 = vpop.f32.mrf.mxu2 }
 0x226   :  { %v214_v31 = vadd.f32 %v343_v29, %v213_v30 }
 0x228   :  { %216 = vst [vmem:[#allocation5] sm:$0x3] %v214_v31 }
 0x229   :  { %227 = dma.vmem_to_hbm [thread:$0]  %s223_s28, 32, %s225_s4, [#allocation4]  }
 0x22a   :  { %396 = dma.done.wait [#allocation4], 32  }
 0x22b   :  { %397 = vsyncadd [#allocation4], 4294967264 }
 0x22c   :  { %232 = vsyncpa [#allocation3], 1 }
 0x22d   :  { %233 = vsyncpa [#allocation4], 1 }

</bundles_post_ra>
